<compile_context>
chip_gen: v6e
topology: v6e:2x2x1
jax: 0.10.0
libtpu: 0.0.40
codegen_flags: <defaults>
</compile_context>

<pallas_src>
import math

import jax
import jax.numpy as jnp
from jax.experimental import pallas as pl
from jax.experimental.pallas import tpu as pltpu


# ----------------------------------------------------------------------------
# Pallas kernel: ChapterHead (head_type='mlp') + softmax over logits
#   vis_h  = relu(Vis2D @ Wv^T)              [tile_b*S, H]   (one dense matmul)
#   fusion = [vis_h per batch row | lang_h | 0-pad]  in VMEM  [tile_b, N1_pad]
#   logits = fusion @ Wh^T_pad + bh          [tile_b, O]
#   prob   = softmax(logits, axis=1)         [tile_b, O]
# ----------------------------------------------------------------------------
def fusion_head_kernel(vis_ref, lang_ref, wvt_ref, wltp_ref, whtp_ref, bh_ref,
                       logits_ref, prob_ref, vish_ref, fusion_ref):
    tb = lang_ref.shape[0]                  # batch tile
    S = vis_ref.shape[0] // tb              # segments per batch row
    H = wvt_ref.shape[1]                    # hidden size

    # (1) Vision projection: one dense MXU matmul over all batch*segment rows
    #     (no structural-zero FLOPs).
    vish_ref[...] = jnp.maximum(
        jnp.dot(vis_ref[...], wvt_ref[...], preferred_element_type=jnp.float32),
        0.0)

    # (2) Language projection.  wltp is zero-padded to fill the entire tail
    #     lane tile of the fusion slab, so this single aligned store also
    #     writes exact zeros into the pad columns (head-weight pad rows are
    #     zero too, so the padded head matmul stays bit-exact).
    fusion_ref[:, S * H:] = jnp.maximum(
        jnp.dot(lang_ref[...], wltp_ref[...], preferred_element_type=jnp.float32),
        0.0)

    # (3) Lane relayout: gather segment s of every batch row (sublane-strided
    #     read, stride = S) into columns [s*H, (s+1)*H) of the fusion slab.
    #     Static unroll; pure data movement, no serial matmul chain.
    for s in range(S):
        fusion_ref[:, s * H:(s + 1) * H] = vish_ref[pl.ds(s, tb, stride=S), :]

    # (4) Head matmul (K = 128-aligned padded (S+1)*H) + bias.
    logits = jnp.dot(fusion_ref[...], whtp_ref[...],
                     preferred_element_type=jnp.float32) + bh_ref[...]
    logits_ref[...] = logits

    # (5) Numerically-stable softmax over dim=1.
    m = jnp.max(logits, axis=1, keepdims=True)
    e = jnp.exp(logits - m)
    denom = jnp.sum(e, axis=1, keepdims=True)
    r = pl.reciprocal(denom, approx=True)       # EUP slot (otherwise idle)
    r = r * (2.0 - denom * r)                   # one Newton step -> ~f32 exact
    prob_ref[...] = e * r


# ----------------------------------------------------------------------------
# One-time parameter preparation (hoisted out of the per-forward path).
# PyTorch Linear weights are [out, in]; repack into kernel-friendly slabs.
# ----------------------------------------------------------------------------
def prepare_fusion_head_params(wl, wv, wh, bh, segment_size, hidden_size):
    S, H = segment_size, hidden_size
    Dl = wl.shape[1]
    O = wh.shape[0]
    n1 = (S + 1) * H
    n1_pad = ((n1 + 127) // 128) * 128        # 128-lane aligned fusion / head K
    lang_slot = n1_pad - S * H                # >= H: tail lane tile(s) of the slab

    wv_t = jnp.asarray(wv, jnp.float32).T                              # [Dv, H]
    wl_t_pad = jnp.zeros((Dl, lang_slot), jnp.float32).at[:, :H].set(
        jnp.asarray(wl, jnp.float32).T)                                # [Dl, lang_slot]
    wh_t_pad = jnp.zeros((n1_pad, O), jnp.float32).at[:n1, :].set(
        jnp.asarray(wh, jnp.float32).T)                                # [n1_pad, O]
    bh2 = jnp.asarray(bh, jnp.float32).reshape(1, O)
    return {"wv_t": wv_t, "wl_t_pad": wl_t_pad, "wh_t_pad": wh_t_pad, "bh2": bh2}


def _batch_tiling(batch, S, Dv, Dl, H, n1_pad, O,
                  vmem_budget_bytes=24 * 1024 * 1024, max_tile=512):
    """Pick (tile_b, n_grid_steps, padded_batch).

    Large tiles amortize the ~0.35us per-grid-step overhead; the 512 cap keeps
    >=2 'parallel' grid steps for v7x's two TensorCores at production batch,
    and the VMEM budget keeps the tiling portable to v7x's 64 MiB.
    """
    itemsize = 4
    per_row = itemsize * (2 * S * Dv     # vision input tile, double-buffered
                          + 2 * Dl       # language input tile, double-buffered
                          + S * H        # vish scratch
                          + n1_pad       # fusion scratch
                          + 4 * O)       # logits/prob outputs, double-buffered
    cap = (vmem_budget_bytes // max(per_row, 1)) // 8 * 8
    cap = max(8, min(max_tile, cap))
    n_steps = max(1, math.ceil(batch / cap))
    tile = math.ceil(math.ceil(batch / n_steps) / 8) * 8
    return tile, n_steps, tile * n_steps


# ----------------------------------------------------------------------------
# Wrapper: per-forward glue + pallas_call
# ----------------------------------------------------------------------------
def fusion_head_pallas(lang_emb, vision_emb, head_params,
                       segment_size, hidden_size, output_size):
    """lang_emb: [B, Dl], vision_emb: [B, S, Dv] -> (logits [B,O], prob [B,O])."""
    B, Dl = lang_emb.shape
    S, H, O = segment_size, hidden_size, output_size
    Dv = vision_emb.shape[-1]

    wv_t = head_params["wv_t"]
    wl_t_pad = head_params["wl_t_pad"]
    wh_t_pad = head_params["wh_t_pad"]
    bh2 = head_params["bh2"]
    n1_pad = wh_t_pad.shape[0]
    lang_slot = wl_t_pad.shape[1]

    tile, n_steps, b_pad = _batch_tiling(B, S, Dv, Dl, H, n1_pad, O)
    if b_pad != B:
        lang_emb = jnp.pad(lang_emb, ((0, b_pad - B), (0, 0)))
        vision_emb = jnp.pad(vision_emb, ((0, b_pad - B), (0, 0), (0, 0)))
    # Free contiguous flatten: row b*S + s  <->  vision_emb[b, s, :]
    vis2d = vision_emb.reshape(b_pad * S, Dv)

    flops = 2 * b_pad * (S * Dv * H + Dl * lang_slot + n1_pad * O)
    bytes_accessed = 4 * (b_pad * S * Dv + b_pad * Dl + Dv * H
                          + Dl * lang_slot + n1_pad * O + O + 2 * b_pad * O)

    resident = dict(pipeline_mode=pl.Buffered(1))   # single-buffer grid-invariant slabs

    logits, prob = pl.pallas_call(
        fusion_head_kernel,
        out_shape=(jax.ShapeDtypeStruct((b_pad, O), jnp.float32),
                   jax.ShapeDtypeStruct((b_pad, O), jnp.float32)),
        grid=(n_steps,),
        in_specs=[
            pl.BlockSpec((tile * S, Dv), lambda i: (i, 0)),              # vision rows (batch-tiled)
            pl.BlockSpec((tile, Dl), lambda i: (i, 0)),                  # language (batch-tiled)
            pl.BlockSpec((Dv, H), lambda i: (0, 0), **resident),         # Wv^T (resident)
            pl.BlockSpec((Dl, lang_slot), lambda i: (0, 0), **resident), # Wl^T (lane-padded, resident)
            pl.BlockSpec((n1_pad, O), lambda i: (0, 0), **resident),     # Wh^T (row-padded, resident)
            pl.BlockSpec((1, O), lambda i: (0, 0), **resident),          # bias (resident)
        ],
        out_specs=(
            pl.BlockSpec((tile, O), lambda i: (i, 0)),                   # logits
            pl.BlockSpec((tile, O), lambda i: (i, 0)),                   # prob
        ),
        scratch_shapes=[
            pltpu.VMEM((tile * S, H), jnp.float32),      # per-(batch,segment) projection
            pltpu.VMEM((tile, n1_pad), jnp.float32),     # fused [vision | lang | 0-pad] slab
        ],
        compiler_params=pltpu.CompilerParams(
            dimension_semantics=("parallel",),           # megacore sharding on v7x
            vmem_limit_bytes=32 * 1024 * 1024),          # explicit; fits v7x's 64 MiB
        cost_estimate=pl.CostEstimate(flops=flops,
                                      transcendentals=b_pad * O,
                                      bytes_accessed=bytes_accessed),
    )(vis2d, lang_emb, wv_t, wl_t_pad, wh_t_pad, bh2)
    return logits[:B], prob[:B]


# ----------------------------------------------------------------------------
# Deterministic stand-in backbones (plain JAX glue).
# TODO(synk): lang_model / vision_model are externally-injected backbones
# (e.g. BERT pooler / CNN); replaced here by deterministic stand-ins since the
# Pallas target is the fusion-head hot path.
# ----------------------------------------------------------------------------
def lang_model_standin(text_ids, attention_mask, emb_table, pool_w):
    tok = emb_table[text_ids]                                  # [B, L, Dl]
    mask = attention_mask.astype(jnp.float32)[..., None]       # [B, L, 1]
    pooled = jnp.sum(tok * mask, axis=1) / jnp.maximum(jnp.sum(mask, axis=1), 1.0)
    return jnp.tanh(pooled @ pool_w)                           # [B, Dl] (pooler_output)


def vision_model_standin(img_clip_bt, w_vis):
    # img_clip_bt: [(B*T), C, H, W] (NCHW, matches the PyTorch rearrange output)
    flat = img_clip_bt.reshape(img_clip_bt.shape[0], -1)       # [(B*T), C*H*W]
    return flat @ w_vis                                        # [(B*T), Dv]


# ----------------------------------------------------------------------------
# Full TwoStream.forward (stand-in backbones + Pallas fusion head)
# ----------------------------------------------------------------------------
def two_stream_forward(img_clip, text_ids, attention_mask, params, head_params, cfg):
    B = img_clip.shape[0]
    S = cfg["segment_size"]

    lang_emb = lang_model_standin(text_ids, attention_mask,
                                  params["emb_table"], params["pool_w"])
    img_bt = img_clip.reshape((-1,) + img_clip.shape[2:])          # (b t) c h w
    vision_emb = vision_model_standin(img_bt, params["w_vis"])
    vision_emb = vision_emb.reshape(B, S, -1)

    logits, prob = fusion_head_pallas(
        lang_emb, vision_emb, head_params,
        cfg["segment_size"], cfg["hidden_size"], cfg["output_size"])
    return logits, prob


def reference_forward(img_clip, text_ids, attention_mask, params, cfg):
    """Pure-JAX reference mirroring the PyTorch ChapterHead('mlp') forward."""
    B = img_clip.shape[0]
    S, H = cfg["segment_size"], cfg["hidden_size"]

    lang_emb = lang_model_standin(text_ids, attention_mask,
                                  params["emb_table"], params["pool_w"])
    img_bt = img_clip.reshape((-1,) + img_clip.shape[2:])
    vision_emb = vision_model_standin(img_bt, params["w_vis"]).reshape(B, S, -1)

    lang_out = jax.nn.relu(lang_emb @ params["wl"].T)[:, None, :]          # [B,1,H]
    vision_out = jax.nn.relu(
        vision_emb.reshape(-1, cfg["vision_embed_size"]) @ params["wv"].T
    ).reshape(B, S, H)
    fusion = jnp.concatenate([vision_out, lang_out], axis=1).reshape(B, -1)
    logits = fusion @ params["wh"].T + params["bh"]
    prob = jax.nn.softmax(logits, axis=1)
    return logits, prob


if __name__ == "__main__":
    # Small shapes consistent with the module
    cfg = dict(lang_embed_size=32, vision_embed_size=48, segment_size=8,
               hidden_size=32, output_size=2)
    B, S = 2, cfg["segment_size"]
    C, Himg, Wimg = 3, 16, 16
    L, vocab = 8, 50

    key = jax.random.PRNGKey(0)
    ks = jax.random.split(key, 10)

    # inputs
    img_clip = jax.random.normal(ks[0], (B, S, C, Himg, Wimg), jnp.float32)
    text_ids = jax.random.randint(ks[1], (B, L), 0, vocab)
    attention_mask = jnp.ones((B, L), jnp.int32)

    # deterministic parameters (PyTorch Linear convention: weight [out, in])
    params = dict(
        emb_table=0.02 * jax.random.normal(ks[2], (vocab, cfg["lang_embed_size"]), jnp.float32),
        pool_w=0.02 * jax.random.normal(ks[3], (cfg["lang_embed_size"], cfg["lang_embed_size"]), jnp.float32),
        w_vis=0.02 * jax.random.normal(ks[4], (C * Himg * Wimg, cfg["vision_embed_size"]), jnp.float32),
        wl=0.02 * jax.random.normal(ks[5], (cfg["hidden_size"], cfg["lang_embed_size"]), jnp.float32),
        wv=0.02 * jax.random.normal(ks[6], (cfg["hidden_size"], cfg["vision_embed_size"]), jnp.float32),
        wh=0.02 * jax.random.normal(ks[7], (cfg["output_size"],
                                            (cfg["segment_size"] + 1) * cfg["hidden_size"]), jnp.float32),
        bh=0.02 * jax.random.normal(ks[8], (cfg["output_size"],), jnp.float32),
    )

    # One-time fusion-head parameter repack (hoisted out of the forward path).
    head_params = prepare_fusion_head_params(
        params["wl"], params["wv"], params["wh"], params["bh"],
        cfg["segment_size"], cfg["hidden_size"])

    logits, prob = jax.jit(
        lambda a, b, c: two_stream_forward(a, b, c, params, head_params, cfg)
    )(img_clip, text_ids, attention_mask)
    jax.block_until_ready((logits, prob))

    ref_logits, ref_prob = reference_forward(img_clip, text_ids, attention_mask, params, cfg)
    assert logits.shape == (B, cfg["output_size"]) and prob.shape == (B, cfg["output_size"])
    assert jnp.allclose(logits, ref_logits, atol=1e-5, rtol=1e-5), "logits mismatch"
    assert jnp.allclose(prob, ref_prob, atol=1e-5, rtol=1e-5), "prob mismatch"
    assert jnp.allclose(jnp.sum(prob, axis=1), 1.0, atol=1e-5), "softmax not normalized"

    print("KERNEL_OK")
</pallas_src>

<mosaic_0001>
module attributes {stable_mosaic.version = 11 : i64} {
  func.func @fusion_head_kernel(%arg0: i32, %arg1: memref<64x48xf32, #tpu.memory_space<vmem>>, %arg2: memref<8x32xf32, #tpu.memory_space<vmem>>, %arg3: memref<48x32xf32, #tpu.memory_space<vmem>>, %arg4: memref<32x128xf32, #tpu.memory_space<vmem>>, %arg5: memref<384x2xf32, #tpu.memory_space<vmem>>, %arg6: memref<1x2xf32, #tpu.memory_space<vmem>>, %arg7: memref<8x2xf32, #tpu.memory_space<vmem>>, %arg8: memref<8x2xf32, #tpu.memory_space<vmem>>, %arg9: memref<64x32xf32, #tpu.memory_space<vmem>>, %arg10: memref<8x384xf32, #tpu.memory_space<vmem>>) attributes {dimension_semantics = [#tpu.dimension_semantics<parallel>], iteration_bounds = array<i64: 1>, scalar_prefetch = 0 : i64, scratch_operands = 2 : i64, tpu.core_type = #tpu.core_type<tc>, window_params = [{transform_indices = @transform_0, window_bounds = array<i64: 64, 48>}, {transform_indices = @transform_1, window_bounds = array<i64: 8, 32>}, {pipeline_mode = #tpu.pipeline_mode<synchronous>, transform_indices = @transform_2, window_bounds = array<i64: 48, 32>}, {pipeline_mode = #tpu.pipeline_mode<synchronous>, transform_indices = @transform_3, window_bounds = array<i64: 32, 128>}, {pipeline_mode = #tpu.pipeline_mode<synchronous>, transform_indices = @transform_4, window_bounds = array<i64: 384, 2>}, {pipeline_mode = #tpu.pipeline_mode<synchronous>, transform_indices = @transform_5, window_bounds = array<i64: 1, 2>}, {transform_indices = @transform_6, window_bounds = array<i64: 8, 2>}, {transform_indices = @transform_7, window_bounds = array<i64: 8, 2>}]} {
    %c0 = arith.constant 0 : index
    %c0_0 = arith.constant 0 : index
    %0 = vector.load %arg1[%c0, %c0_0] : memref<64x48xf32, #tpu.memory_space<vmem>>, vector<64x48xf32>
    %c0_1 = arith.constant 0 : index
    %c0_2 = arith.constant 0 : index
    %1 = vector.load %arg3[%c0_1, %c0_2] : memref<48x32xf32, #tpu.memory_space<vmem>>, vector<48x32xf32>
    %cst = arith.constant dense<0.000000e+00> : vector<64x32xf32>
    %2 = tpu.matmul %0, %1, %cst {dimension_numbers = #tpu.dot_dimension_numbers<[1], [0], [0], [1], [0, 0, 1, 1], [], []>} : vector<64x48xf32>, vector<48x32xf32>, vector<64x32xf32> -> vector<64x32xf32>
    %cst_3 = arith.constant 0.000000e+00 : f32
    %3 = vector.broadcast %cst_3 : f32 to vector<64x32xf32>
    %4 = arith.maximumf %2, %3 : vector<64x32xf32>
    %c0_4 = arith.constant 0 : index
    %c0_5 = arith.constant 0 : index
    %5 = vector.load %arg9[%c0_4, %c0_5] : memref<64x32xf32, #tpu.memory_space<vmem>>, vector<64x32xf32>
    tpu.vector_store %arg9[%c0_4, %c0_5], %4 {strides = array<i32>} : memref<64x32xf32, #tpu.memory_space<vmem>>, vector<64x32xf32>,
    %c0_6 = arith.constant 0 : index
    %c0_7 = arith.constant 0 : index
    %6 = vector.load %arg2[%c0_6, %c0_7] : memref<8x32xf32, #tpu.memory_space<vmem>>, vector<8x32xf32>
    %c0_8 = arith.constant 0 : index
    %c0_9 = arith.constant 0 : index
    %7 = vector.load %arg4[%c0_8, %c0_9] : memref<32x128xf32, #tpu.memory_space<vmem>>, vector<32x128xf32>
    %cst_10 = arith.constant dense<0.000000e+00> : vector<8x128xf32>
    %8 = tpu.matmul %6, %7, %cst_10 {dimension_numbers = #tpu.dot_dimension_numbers<[1], [0], [0], [1], [0, 0, 1, 1], [], []>} : vector<8x32xf32>, vector<32x128xf32>, vector<8x128xf32> -> vector<8x128xf32>
    %cst_11 = arith.constant 0.000000e+00 : f32
    %9 = vector.broadcast %cst_11 : f32 to vector<8x128xf32>
    %10 = arith.maximumf %8, %9 : vector<8x128xf32>
    %c0_12 = arith.constant 0 : index
    %c256 = arith.constant 256 : index
    %11 = vector.load %arg10[%c0_12, %c256] : memref<8x384xf32, #tpu.memory_space<vmem>>, vector<8x128xf32>
    tpu.vector_store %arg10[%c0_12, %c256], %10 {strides = array<i32>} : memref<8x384xf32, #tpu.memory_space<vmem>>, vector<8x128xf32>,
    %c0_13 = arith.constant 0 : index
    %c0_14 = arith.constant 0 : index
    %12 = tpu.strided_load %arg9[%c0_13, %c0_14] {strides = array<i32: 8, 1>} : memref<64x32xf32, #tpu.memory_space<vmem>>, vector<8x32xf32>
    %c0_15 = arith.constant 0 : index
    %c0_16 = arith.constant 0 : index
    %13 = vector.load %arg10[%c0_15, %c0_16] : memref<8x384xf32, #tpu.memory_space<vmem>>, vector<8x32xf32>
    tpu.vector_store %arg10[%c0_15, %c0_16], %12 {strides = array<i32>} : memref<8x384xf32, #tpu.memory_space<vmem>>, vector<8x32xf32>,
    %c1 = arith.constant 1 : index
    %c0_17 = arith.constant 0 : index
    %14 = tpu.strided_load %arg9[%c1, %c0_17] {strides = array<i32: 8, 1>} : memref<64x32xf32, #tpu.memory_space<vmem>>, vector<8x32xf32>
    %c0_18 = arith.constant 0 : index
    %c32 = arith.constant 32 : index
    %15 = vector.load %arg10[%c0_18, %c32] : memref<8x384xf32, #tpu.memory_space<vmem>>, vector<8x32xf32>
    tpu.vector_store %arg10[%c0_18, %c32], %14 {strides = array<i32>} : memref<8x384xf32, #tpu.memory_space<vmem>>, vector<8x32xf32>,
    %c2 = arith.constant 2 : index
    %c0_19 = arith.constant 0 : index
    %16 = tpu.strided_load %arg9[%c2, %c0_19] {strides = array<i32: 8, 1>} : memref<64x32xf32, #tpu.memory_space<vmem>>, vector<8x32xf32>
    %c0_20 = arith.constant 0 : index
    %c64 = arith.constant 64 : index
    %17 = vector.load %arg10[%c0_20, %c64] : memref<8x384xf32, #tpu.memory_space<vmem>>, vector<8x32xf32>
    tpu.vector_store %arg10[%c0_20, %c64], %16 {strides = array<i32>} : memref<8x384xf32, #tpu.memory_space<vmem>>, vector<8x32xf32>,
    %c3 = arith.constant 3 : index
    %c0_21 = arith.constant 0 : index
    %18 = tpu.strided_load %arg9[%c3, %c0_21] {strides = array<i32: 8, 1>} : memref<64x32xf32, #tpu.memory_space<vmem>>, vector<8x32xf32>
    %c0_22 = arith.constant 0 : index
    %c96 = arith.constant 96 : index
    %19 = vector.load %arg10[%c0_22, %c96] : memref<8x384xf32, #tpu.memory_space<vmem>>, vector<8x32xf32>
    tpu.vector_store %arg10[%c0_22, %c96], %18 {strides = array<i32>} : memref<8x384xf32, #tpu.memory_space<vmem>>, vector<8x32xf32>,
    %c4 = arith.constant 4 : index
    %c0_23 = arith.constant 0 : index
    %20 = tpu.strided_load %arg9[%c4, %c0_23] {strides = array<i32: 8, 1>} : memref<64x32xf32, #tpu.memory_space<vmem>>, vector<8x32xf32>
    %c0_24 = arith.constant 0 : index
    %c128 = arith.constant 128 : index
    %21 = vector.load %arg10[%c0_24, %c128] : memref<8x384xf32, #tpu.memory_space<vmem>>, vector<8x32xf32>
    tpu.vector_store %arg10[%c0_24, %c128], %20 {strides = array<i32>} : memref<8x384xf32, #tpu.memory_space<vmem>>, vector<8x32xf32>,
    %c5 = arith.constant 5 : index
    %c0_25 = arith.constant 0 : index
    %22 = tpu.strided_load %arg9[%c5, %c0_25] {strides = array<i32: 8, 1>} : memref<64x32xf32, #tpu.memory_space<vmem>>, vector<8x32xf32>
    %c0_26 = arith.constant 0 : index
    %c160 = arith.constant 160 : index
    %23 = vector.load %arg10[%c0_26, %c160] : memref<8x384xf32, #tpu.memory_space<vmem>>, vector<8x32xf32>
    tpu.vector_store %arg10[%c0_26, %c160], %22 {strides = array<i32>} : memref<8x384xf32, #tpu.memory_space<vmem>>, vector<8x32xf32>,
    %c6 = arith.constant 6 : index
    %c0_27 = arith.constant 0 : index
    %24 = tpu.strided_load %arg9[%c6, %c0_27] {strides = array<i32: 8, 1>} : memref<64x32xf32, #tpu.memory_space<vmem>>, vector<8x32xf32>
    %c0_28 = arith.constant 0 : index
    %c192 = arith.constant 192 : index
    %25 = vector.load %arg10[%c0_28, %c192] : memref<8x384xf32, #tpu.memory_space<vmem>>, vector<8x32xf32>
    tpu.vector_store %arg10[%c0_28, %c192], %24 {strides = array<i32>} : memref<8x384xf32, #tpu.memory_space<vmem>>, vector<8x32xf32>,
    %c7 = arith.constant 7 : index
    %c0_29 = arith.constant 0 : index
    %26 = tpu.strided_load %arg9[%c7, %c0_29] {strides = array<i32: 8, 1>} : memref<64x32xf32, #tpu.memory_space<vmem>>, vector<8x32xf32>
    %c0_30 = arith.constant 0 : index
    %c224 = arith.constant 224 : index
    %27 = vector.load %arg10[%c0_30, %c224] : memref<8x384xf32, #tpu.memory_space<vmem>>, vector<8x32xf32>
    tpu.vector_store %arg10[%c0_30, %c224], %26 {strides = array<i32>} : memref<8x384xf32, #tpu.memory_space<vmem>>, vector<8x32xf32>,
    %c0_31 = arith.constant 0 : index
    %c0_32 = arith.constant 0 : index
    %28 = vector.load %arg10[%c0_31, %c0_32] : memref<8x384xf32, #tpu.memory_space<vmem>>, vector<8x384xf32>
    %c0_33 = arith.constant 0 : index
    %c0_34 = arith.constant 0 : index
    %29 = vector.load %arg5[%c0_33, %c0_34] : memref<384x2xf32, #tpu.memory_space<vmem>>, vector<384x2xf32>
    %cst_35 = arith.constant dense<0.000000e+00> : vector<8x2xf32>
    %30 = tpu.matmul %28, %29, %cst_35 {dimension_numbers = #tpu.dot_dimension_numbers<[1], [0], [0], [1], [0, 0, 1, 1], [], []>} : vector<8x384xf32>, vector<384x2xf32>, vector<8x2xf32> -> vector<8x2xf32>
    %c0_36 = arith.constant 0 : index
    %c0_37 = arith.constant 0 : index
    %31 = vector.load %arg6[%c0_36, %c0_37] : memref<1x2xf32, #tpu.memory_space<vmem>>, vector<1x2xf32>
    %32 = vector.broadcast %31 : vector<1x2xf32> to vector<8x2xf32>
    %33 = arith.addf %30, %32 : vector<8x2xf32>
    %c0_38 = arith.constant 0 : index
    %c0_39 = arith.constant 0 : index
    %34 = vector.load %arg7[%c0_38, %c0_39] : memref<8x2xf32, #tpu.memory_space<vmem>>, vector<8x2xf32>
    tpu.vector_store %arg7[%c0_38, %c0_39], %33 {strides = array<i32>} : memref<8x2xf32, #tpu.memory_space<vmem>>, vector<8x2xf32>,
    %cst_40 = arith.constant dense<0xFF800000> : vector<8xf32>
    %35 = vector.multi_reduction <maximumf>, %33, %cst_40 [1] : vector<8x2xf32> to vector<8xf32>
    %36 = vector.shape_cast %35 : vector<8xf32> to vector<8x1xf32>
    %37 = vector.broadcast %36 : vector<8x1xf32> to vector<8x2xf32>
    %38 = arith.subf %33, %37 : vector<8x2xf32>
    %39 = math.exp %38 : vector<8x2xf32>
    %cst_41 = arith.constant dense<0.000000e+00> : vector<8xf32>
    %40 = vector.multi_reduction <add>, %39, %cst_41 [1] : vector<8x2xf32> to vector<8xf32>
    %41 = vector.shape_cast %40 : vector<8xf32> to vector<8x1xf32>
    %42 = tpu.reciprocal %41 {approx = true} : vector<8x1xf32> -> vector<8x1xf32>
    %43 = arith.mulf %41, %42 : vector<8x1xf32>
    %cst_42 = arith.constant 2.000000e+00 : f32
    %44 = vector.broadcast %cst_42 : f32 to vector<8x1xf32>
    %45 = arith.subf %44, %43 : vector<8x1xf32>
    %46 = arith.mulf %42, %45 : vector<8x1xf32>
    %47 = vector.broadcast %46 : vector<8x1xf32> to vector<8x2xf32>
    %48 = arith.mulf %39, %47 : vector<8x2xf32>
    %c0_43 = arith.constant 0 : index
    %c0_44 = arith.constant 0 : index
    %49 = vector.load %arg8[%c0_43, %c0_44] : memref<8x2xf32, #tpu.memory_space<vmem>>, vector<8x2xf32>
    tpu.vector_store %arg8[%c0_43, %c0_44], %48 {strides = array<i32>} : memref<8x2xf32, #tpu.memory_space<vmem>>, vector<8x2xf32>,
    return
  }
  func.func @transform_0(%arg0: i32) -> (i32, i32) {
    %c0_i32 = arith.constant 0 : i32
    %c0_i32_0 = arith.constant 0 : i32
    return %arg0, %c0_i32 : i32, i32
  }
  func.func @transform_1(%arg0: i32) -> (i32, i32) {
    %c0_i32 = arith.constant 0 : i32
    %c0_i32_0 = arith.constant 0 : i32
    return %arg0, %c0_i32 : i32, i32
  }
  func.func @transform_2(%arg0: i32) -> (i32, i32) {
    %c0_i32 = arith.constant 0 : i32
    %c0_i32_0 = arith.constant 0 : i32
    %c0_i32_1 = arith.constant 0 : i32
    return %c0_i32, %c0_i32_0 : i32, i32
  }
  func.func @transform_3(%arg0: i32) -> (i32, i32) {
    %c0_i32 = arith.constant 0 : i32
    %c0_i32_0 = arith.constant 0 : i32
    %c0_i32_1 = arith.constant 0 : i32
    return %c0_i32, %c0_i32_0 : i32, i32
  }
  func.func @transform_4(%arg0: i32) -> (i32, i32) {
    %c0_i32 = arith.constant 0 : i32
    %c0_i32_0 = arith.constant 0 : i32
    %c0_i32_1 = arith.constant 0 : i32
    return %c0_i32, %c0_i32_0 : i32, i32
  }
  func.func @transform_5(%arg0: i32) -> (i32, i32) {
    %c0_i32 = arith.constant 0 : i32
    %c0_i32_0 = arith.constant 0 : i32
    %c0_i32_1 = arith.constant 0 : i32
    return %c0_i32, %c0_i32_0 : i32, i32
  }
  func.func @transform_6(%arg0: i32) -> (i32, i32) {
    %c0_i32 = arith.constant 0 : i32
    %c0_i32_0 = arith.constant 0 : i32
    return %arg0, %c0_i32 : i32, i32
  }
  func.func @transform_7(%arg0: i32) -> (i32, i32) {
    %c0_i32 = arith.constant 0 : i32
    %c0_i32_0 = arith.constant 0 : i32
    return %arg0, %c0_i32 : i32, i32
  }
}

</mosaic_0001>

<bundles_post_ra>
// kernel: _lambda_.1
= control target key start
LH: loop header
LB: loop body
LE: loop exit
PB: predicated region body
PF: predicated region fallthrough
CT: control target
= control target key end

     0   :  { %vm39_vm0 = vcmask 392192   ;;  %v715_v2 = vmov 0.0   ;;  %vm716_vm1 = vmmov 0   ;;  %vm177_vm2 = vcmask 261120   ;;  %s717_s8 = smov 64   ;;  %s718_s9 = smov 32   ;;  %s1022_s2 = inlined_call_operand.vmem [shape: f32[48,32], index: 2, kind: input, shape index: {}]   ;;  %s1023_s0 = inlined_call_operand.vmem [shape: f32[64,48], index: 0, kind: input, shape index: {}]   ;;  %s1024_s3 = inlined_call_operand.vmem [shape: f32[32,128], index: 3, kind: input, shape index: {}]   ;;  %s1025_s1 = inlined_call_operand.vmem [shape: f32[8,32], index: 1, kind: input, shape index: {}]   ;;  %s1026_s4 = inlined_call_operand.vmem [shape: f32[384,2], index: 4, kind: input, shape index: {}]   ;;  %s1027_s5 = inlined_call_operand.vmem [shape: f32[1,2], index: 5, kind: input, shape index: {}]   ;;  %s1028_s6 = inlined_call_operand.vmem [shape: f32[8,2], index: 6, kind: output, shape index: {0}]   ;;  %s1029_s7 = inlined_call_operand.vmem [shape: f32[8,2], index: 7, kind: output, shape index: {1}]  }
   0x1   :  { %v38_v0 = vld [vmem:[%s1022_s2 + $0x28] sm:$0xff]  ;;  %v37_v1 = vld [vmem:[%s1022_s2 + $0x20] sm:$0xff]  ;;  %660 = vmatprep.subr.mxu1 %v715_v2  ;;  %668 = vmatprep.mubr.msk.f32.mxu1 %vm716_vm1, %v715_v2  ;;  %v36_v3 = vld [vmem:[%s1022_s2 + $0x18] sm:$0xff]  ;;  %s719_s25 = smov 96   ;;  %vm278_vm3 = vcmask 523520   ;;  %vm288_vm4 = vcmask 785920  }
   0x2   :  { %636 = vmatprep.subr.mxu0 %v38_v0  ;;  %v25_v4 = vld [vmem:[%s1023_s0] sm:$0xff]  ;;  %v35_v5 = vld [vmem:[%s1022_s2 + $0x10] sm:$0xff]  ;;  %v190_v6 = vld [vmem:[%s1024_s3 + $0x18] sm:$0xff]  ;;  %vm298_vm5 = vcmask 1048320   ;;  %vm530_vm6 = vcmask 15360  }
   0x3   :  { %637 = vmatpush3.msra.mxu0 %v38_v0  ;;  %648 = vmatprep.mubr.msk.f32.mxu0 %vm39_vm0, %v25_v4  ;;  %v189_v7 = vld [vmem:[%s1024_s3 + $0x10] sm:$0xff]  ;;  %v34_v8 = vld [vmem:[%s1022_s2 + $0x8] sm:$0xff]  ;;  %v33_v10 = vld [vmem:[%s1022_s2] sm:$0xff] }
   0x4   :  { %638 = vmatprep.subr.mxu0 %v37_v1  ;;  %661 = vmatpush3.msra.mxu1 %v190_v6  ;;  %v188_v9 = vld [vmem:[%s1024_s3 + $0x8] sm:$0xff]  ;;  %v187_v11 = vld [vmem:[%s1024_s3] sm:$0xff]  ;;  %v27_v14 = vld [vmem:[%s1023_s0 + $0x10] sm:$0xff] }
   0x5   :  { %639 = vmatpush3.msra.mxu0 %v37_v1  ;;  %662 = vmatprep.subr.mxu1 %v715_v2  ;;  %v186_v12 = vld [vmem:[%s1025_s1] sm:$0xff]  ;;  %v26_v13 = vld [vmem:[%s1023_s0 + $0x8] sm:$0xff]  ;;  %v28_v15 = vld [vmem:[%s1023_s0 + $0x18] sm:$0xff] }
   0x6   :  { %640 = vmatprep.subr.mxu0 %v36_v3  ;;  %663 = vmatpush3.msra.mxu1 %v189_v7  ;;  %v29_v16 = vld [vmem:[%s1023_s0 + $0x20] sm:$0xff]  ;;  %v30_v17 = vld [vmem:[%s1023_s0 + $0x28] sm:$0xff]  ;;  %v31_v18 = vld [vmem:[%s1023_s0 + $0x30] sm:$0xff] }
   0x7   :  { %641 = vmatpush3.msra.mxu0 %v36_v3  ;;  %664 = vmatprep.subr.mxu1 %v715_v2  ;;  %v32_v19 = vld [vmem:[%s1023_s0 + $0x38] sm:$0xff]  ;;  %v365_v22 = vld [vmem:[%s1026_s4 + $0xf0] sm:$0xff]  ;;  %v364_v24 = vld [vmem:[%s1026_s4 + $0xe8] sm:$0xff] }
   0x8   :  { %642 = vmatprep.subr.mxu0 %v35_v5  ;;  %665 = vmatpush3.msra.mxu1 %v188_v9  ;;  %v366_v20 = vld [vmem:[%s1026_s4 + $0xf8] sm:$0xff]  ;;  %v349_v23 = vld [vmem:[%s1026_s4 + $0x70] sm:$0xff]  ;;  %v348_v26 = vld [vmem:[%s1026_s4 + $0x68] sm:$0xff] }
   0x9   :  { %643 = vmatpush3.msra.mxu0 %v35_v5  ;;  %666 = vmatprep.subr.mxu1 %v715_v2  ;;  %v350_v21 = vld [vmem:[%s1026_s4 + $0x78] sm:$0xff]  ;;  %v381_v27 = vld [vmem:[%s1026_s4 + $0x170] sm:$0xff]  ;;  %v363_v28 = vld [vmem:[%s1026_s4 + $0xe0] sm:$0xff] }
   0xa   :  { %644 = vmatprep.subr.mxu0 %v34_v8  ;;  %667 = vmatpush3.msra.mxu1 %v187_v11  ;;  %v382_v25 = vld [vmem:[%s1026_s4 + $0x178] sm:$0xff]  ;;  %v380_v29 = vld [vmem:[%s1026_s4 + $0x168] sm:$0xff]  ;;  %v347_v30 = vld [vmem:[%s1026_s4 + $0x60] sm:$0xff] }
   0xb   :  { %645 = vmatpush3.msra.mxu0 %v34_v8  ;;  %669 = vmatmul.mubr.msk.f32.vlgmr.msra.gmra.mxu1 %vm177_vm2, %v186_v12  ;;  %v362_v31 = vld [vmem:[%s1026_s4 + $0xd8] sm:$0xff]  ;;  %v379_v32 = vld [vmem:[%s1026_s4 + $0x160] sm:$0xff]  ;;  %v361_v34 = vld [vmem:[%s1026_s4 + $0xd0] sm:$0xff] }
   0xc   :  { %646 = vmatprep.subr.mxu0 %v33_v10  ;;  %584 = vmatprep.subr.mxu1 %v366_v20  ;;  %v346_v33 = vld [vmem:[%s1026_s4 + $0x58] sm:$0xff]  ;;  %v345_v36 = vld [vmem:[%s1026_s4 + $0x50] sm:$0xff]  ;;  %v360_v37 = vld [vmem:[%s1026_s4 + $0xc8] sm:$0xff] }
   0xd   :  { %647 = vmatpush3.msra.mxu0 %v33_v10  ;;  %585 = vmatpush3.msra.mxu1 %v350_v21  ;;  %v378_v35 = vld [vmem:[%s1026_s4 + $0x158] sm:$0xff]  ;;  %v344_v38 = vld [vmem:[%s1026_s4 + $0x48] sm:$0xff]  ;;  %v359_v39 = vld [vmem:[%s1026_s4 + $0xc0] sm:$0xff] }
   0xe   :  { %649 = vmatmul.mubr.msk.f32.vlgmr.msra.gmra.mxu0 %vm39_vm0, %v26_v13  ;;  %671 = vmatprep.subr.mxu0 %v715_v2  ;;  %v343_v55 = vld [vmem:[%s1026_s4 + $0x40] sm:$0xff]  ;;  %v377_v56 = vld [vmem:[%s1026_s4 + $0x150] sm:$0xff]  ;;  %v358_v57 = vld [vmem:[%s1026_s4 + $0xb8] sm:$0xff] }
   0xf   :  { %651 = vmatprep.mubr.msk.f32.mxu0 %vm39_vm0, %v27_v14  ;;  %586 = vmatprep.subr.mxu1 %v365_v22  ;;  %v342_v59 = vld [vmem:[%s1026_s4 + $0x38] sm:$0xff]  ;;  %v376_v60 = vld [vmem:[%s1026_s4 + $0x148] sm:$0xff]  ;;  %v357_v61 = vld [vmem:[%s1026_s4 + $0xb0] sm:$0xff] }
  0x10   :  { %672 = vmatpush3.msra.mxu0 %v382_v25  ;;  %587 = vmatpush3.msra.mxu1 %v349_v23  ;;  %v341_v62 = vld [vmem:[%s1026_s4 + $0x30] sm:$0xff]  ;;  %v375_v63 = vld [vmem:[%s1026_s4 + $0x140] sm:$0xff]  ;;  %v356_v0 = vld [vmem:[%s1026_s4 + $0xa8] sm:$0xff] }
  0x11   :  { %673 = vmatprep.subr.mxu0 %v715_v2  ;;  %588 = vmatprep.subr.mxu1 %v364_v24  ;;  %v340_v1 = vld [vmem:[%s1026_s4 + $0x28] sm:$0xff]  ;;  %v374_v3 = vld [vmem:[%s1026_s4 + $0x138] sm:$0xff]  ;;  %v355_v4 = vld [vmem:[%s1026_s4 + $0xa0] sm:$0xff] }
  0x12   :  { %652 = vmatmul.mubr.msk.f32.gmra.mxu0 %vm39_vm0, %v28_v15  ;;  %589 = vmatpush3.msra.mxu1 %v348_v26  ;;  %v339_v6 = vld [vmem:[%s1026_s4 + $0x20] sm:$0xff]  ;;  %v373_v7 = vld [vmem:[%s1026_s4 + $0x130] sm:$0xff]  ;;  %v354_v10 = vld [vmem:[%s1026_s4 + $0x98] sm:$0xff] }
  0x13   :  { %654 = vmatprep.mubr.msk.f32.mxu0 %vm39_vm0, %v29_v16  ;;  %674 = vmatpush3.msra.mxu0 %v381_v27  ;;  %v372_v20 = vld [vmem:[%s1026_s4 + $0x128] sm:$0xff]  ;;  %v353_v21 = vld [vmem:[%s1026_s4 + $0x90] sm:$0xff] }
  0x14   :  { %675 = vmatprep.subr.mxu0 %v715_v2  ;;  %590 = vmatprep.subr.mxu1 %v363_v28 }
  0x15   :  { %676 = vmatpush3.msra.mxu0 %v380_v29  ;;  %591 = vmatpush3.msra.mxu1 %v347_v30  ;;  %v337_v30 = vld [vmem:[%s1026_s4 + $0x10] sm:$0xff] }
  0x16   :  { %655 = vmatmul.mubr.msk.f32.gmra.mxu0 %vm39_vm0, %v30_v17  ;;  %677 = vmatprep.subr.mxu0 %v715_v2 }
  0x17   :  { %657 = vmatprep.mubr.msk.f32.mxu0 %vm39_vm0, %v31_v18  ;;  %592 = vmatprep.subr.mxu1 %v362_v31  ;;  %v371_v31 = vld [vmem:[%s1026_s4 + $0x120] sm:$0xff] }
  0x18   :  { %678 = vmatpush3.msra.mxu0 %v379_v32  ;;  %593 = vmatpush3.msra.mxu1 %v346_v33 }
  0x19   :  { %679 = vmatprep.subr.mxu0 %v715_v2  ;;  %594 = vmatprep.subr.mxu1 %v361_v34 }
  0x1a   :  { %658 = vmatmul.mubr.msk.f32.gmra.mxu0 %vm39_vm0, %v32_v19  ;;  %595 = vmatpush3.msra.mxu1 %v345_v36  ;;  %v338_v19 = vld [vmem:[%s1026_s4 + $0x18] sm:$0xff] }
  0x1b   :  { %703 = vmatprep.mubr.msk.f32.mxu0 %vm716_vm1, %v715_v2  ;;  %680 = vmatpush3.msra.mxu0 %v378_v35  ;;  %v352_v35 = vld [vmem:[%s1026_s4 + $0x88] sm:$0xff] }
  0x1c   :  { %681 = vmatprep.subr.mxu0 %v715_v2  ;;  %596 = vmatprep.subr.mxu1 %v360_v37  ;;  %v336_v37 = vld [vmem:[%s1026_s4 + $0x8] sm:$0xff] }
  0x1d   :  { %597 = vmatpush3.msra.mxu1 %v344_v38  ;;  %682 = vmatpush3.msra.mxu0 %v377_v56  ;;  %v370_v38 = vld [vmem:[%s1026_s4 + $0x118] sm:$0xff] }
  0x1e   :  { %598 = vmatprep.subr.mxu1 %v359_v39  ;;  %683 = vmatprep.subr.mxu0 %v715_v2  ;;  %v351_v39 = vld [vmem:[%s1026_s4 + $0x80] sm:$0xff] }
  0x1f   :  { %599 = vmatpush3.msra.mxu1 %v343_v55  ;;  %684 = vmatpush3.msra.mxu0 %v376_v60 }
  0x20   :  { %600 = vmatprep.subr.mxu1 %v358_v57  ;;  %685 = vmatprep.subr.mxu0 %v715_v2 }
  0x21   :  { %601 = vmatpush3.msra.mxu1 %v342_v59  ;;  %686 = vmatpush3.msra.mxu0 %v375_v63  ;;  %v564_v59 = vld [vmem:[%s1027_s5] ss:$0 sm:$0xff] }
  0x22   :  { %602 = vmatprep.subr.mxu1 %v357_v61  ;;  %687 = vmatprep.subr.mxu0 %v715_v2 }
  0x23   :  { %603 = vmatpush3.msra.mxu1 %v341_v62  ;;  %688 = vmatpush3.msra.mxu0 %v374_v3 }
  0x24   :  { %604 = vmatprep.subr.mxu1 %v356_v0  ;;  %689 = vmatprep.subr.mxu0 %v715_v2 }
  0x25   :  { %605 = vmatpush3.msra.mxu1 %v340_v1  ;;  %690 = vmatpush3.msra.mxu0 %v373_v7 }
  0x26   :  { %606 = vmatprep.subr.mxu1 %v355_v4  ;;  %691 = vmatprep.subr.mxu0 %v715_v2 }
  0x27   :  { %607 = vmatpush3.msra.mxu1 %v339_v6  ;;  %692 = vmatpush3.msra.mxu0 %v372_v20 }
  0x28   :  { %608 = vmatprep.subr.mxu1 %v354_v10  ;;  %693 = vmatprep.subr.mxu0 %v715_v2 }
  0x29   :  { %609 = vmatpush3.msra.mxu1 %v338_v19  ;;  %694 = vmatpush3.msra.mxu0 %v371_v31 }
  0x2a   :  { %610 = vmatprep.subr.mxu1 %v353_v21  ;;  %695 = vmatprep.subr.mxu0 %v715_v2 }
  0x2b   :  { %611 = vmatpush3.msra.mxu1 %v337_v30  ;;  %696 = vmatpush3.msra.mxu0 %v370_v38 }
  0x2c   :  { %612 = vmatprep.subr.mxu1 %v352_v35  ;;  %697 = vmatprep.subr.mxu0 %v715_v2 }
  0x2d   :  { %613 = vmatpush3.msra.mxu1 %v336_v37 }
  0x2e   :  { %614 = vmatprep.subr.mxu1 %v351_v39 }
  0xcb   :  { %v953_v8 = vpop.f32.mrf.mxu1 }
  0xcc   :  { %v264_v11 = vmax.f32 %v953_v8, 0.0 }
  0xcd   :  { %v670_v14 = vpop.f32.mrf.mxu1 }
  0xce   :  { %v650_v40 = vpop.f32.mrf.mxu0 }
  0xcf   :  { %v170_v41 = vmax.f32 %v650_v40, 0.0 }
  0xd0   :  { %v130_v42 = vpop.f32.mrf.mxu0 }
  0xd1   :  { %179 = vst.msk [vmem:[#allocation2 + $0x8] sm:$0xff] %vm177_vm2, %v170_v41  ;;  %v169_v43 = vmax.f32 %v130_v42, 0.0 }
  0xd2   :  { %v653_v44 = vpop.f32.mrf.mxu0 }
  0xd3   :  { %178 = vst.msk [vmem:[#allocation2] sm:$0xff] %vm177_vm2, %v169_v43  ;;  %v172_v45 = vmax.f32 %v653_v44, 0.0  ;;  %v335_v44 = vld [vmem:[%s1026_s4] sm:$0xff] }
  0xd4   :  { %v140_v46 = vpop.f32.mrf.mxu0  ;;  %615 = vmatpush3.msra.mxu1 %v335_v44 }
  0xd5   :  { %181 = vst.msk [vmem:[#allocation2 + $0x18] sm:$0xff] %vm177_vm2, %v172_v45  ;;  %v171_v47 = vmax.f32 %v140_v46, 0.0  ;;  %v369_v45 = vld [vmem:[%s1026_s4 + $0x110] sm:$0xff]  ;;  %v368_v46 = vld [vmem:[%s1026_s4 + $0x108] sm:$0xff] }
  0xd6   :  { %v656_v48 = vpop.f32.mrf.mxu0  ;;  %698 = vmatpush3.msra.mxu0 %v369_v45 }
  0xd7   :  { %180 = vst.msk [vmem:[#allocation2 + $0x10] sm:$0xff] %vm177_vm2, %v171_v47  ;;  %v174_v49 = vmax.f32 %v656_v48, 0.0  ;;  %699 = vmatprep.subr.mxu0 %v715_v2  ;;  %v367_v47 = vld [vmem:[%s1026_s4 + $0x100] sm:$0xff] }
  0xd8   :  { %v150_v50 = vpop.f32.mrf.mxu0  ;;  %700 = vmatpush3.msra.mxu0 %v368_v46 }
  0xd9   :  { %183 = vst.msk [vmem:[#allocation2 + $0x28] sm:$0xff] %vm177_vm2, %v174_v49  ;;  %v173_v51 = vmax.f32 %v150_v50, 0.0  ;;  %701 = vmatprep.subr.mxu0 %v715_v2 }
  0xda   :  { %v659_v52 = vpop.f32.mrf.mxu0  ;;  %702 = vmatpush3.msra.mxu0 %v367_v47 }
  0xdb   :  { %182 = vst.msk [vmem:[#allocation2 + $0x20] sm:$0xff] %vm177_vm2, %v173_v51  ;;  %v176_v53 = vmax.f32 %v659_v52, 0.0  ;;  %704 = vmatmul.mubr.f32.vlgmr.msra.gmra.mxu0 %v264_v11 }
  0xdc   :  { %v160_v54 = vpop.f32.mrf.mxu0 }
  0xdd   :  { %185 = vst.msk [vmem:[#allocation2 + $0x38] sm:$0xff] %vm177_vm2, %v176_v53  ;;  %v175_v58 = vmax.f32 %v160_v54, 0.0 }
  0xde   :  { %v315_v5 = vld [vmem:[#allocation2 + $0x6] ss:$8 sm:$0xf]  ;;  %v306_v9 = vld [vmem:[#allocation2 + $0x5] ss:$8 sm:$0xf] }
  0xdf   :  { %184 = vst.msk [vmem:[#allocation2 + $0x30] sm:$0xff] %vm177_vm2, %v175_v58  ;;  %v301_v17 = vld [vmem:[#allocation2 + $0x4] ss:$8 sm:$0xf] }
  0xe0   :  { %v266_v18 = vld [vmem:[#allocation2] ss:$8 sm:$0xf]  ;;  %v281_v22 = vld [vmem:[#allocation2 + $0x2] ss:$8 sm:$0xf] }
  0xe1   :  { %v271_v27 = vld [vmem:[#allocation2 + $0x1] ss:$8 sm:$0xf]  ;;  %v291_v40 = vld [vmem:[#allocation2 + $0x3] ss:$8 sm:$0xf] }
  0xe2   :  { %v324_v41 = vld [vmem:[#allocation2 + $0x7] ss:$8 sm:$0xf] }
  0xe6   :  { %v316_v12 = vld [vmem:[#allocation2 + $0x6] ss:$8 sm:$0xf0]  ;;  %v307_v13 = vld [vmem:[#allocation2 + $0x5] ss:$8 sm:$0xf0] }
  0xe7   :  { %v317_v15 = vor.u32 %v316_v12, %v315_v5  ;;  %v308_v16 = vor.u32 %v307_v13, %v306_v9  ;;  %v282_v23 = vld [vmem:[#allocation2 + $0x2] ss:$8 sm:$0xf0]  ;;  %v272_v24 = vld [vmem:[#allocation2 + $0x1] ss:$8 sm:$0xf0] }
  0xe8   :  { %v302_v25 = vld [vmem:[#allocation2 + $0x4] ss:$8 sm:$0xf0]  ;;  %v267_v26 = vld [vmem:[#allocation2] ss:$8 sm:$0xf0]  ;;  %v283_v32 = vor.u32 %v282_v23, %v281_v22  ;;  %v273_v33 = vor.u32 %v272_v24, %v271_v27 }
  0xe9   :  { %319 = vrot.lane.b32.xlu1 %v317_v15, %s717_s8  ;;  %310 = vrot.lane.b32.xlu0 %v308_v16, %s718_s9  ;;  %v303_v28 = vor.u32 %v302_v25, %v301_v17  ;;  %v268_v29 = vor.u32 %v267_v26, %v266_v18  ;;  %v292_v34 = vld [vmem:[#allocation2 + $0x3] ss:$8 sm:$0xf0]  ;;  %v325_v36 = vld [vmem:[#allocation2 + $0x7] ss:$8 sm:$0xf0] }
  0xea   :  { %v293_v42 = vor.u32 %v292_v34, %v291_v40  ;;  %v326_v43 = vor.u32 %v325_v36, %v324_v41 }
  0xeb   :  { %304 = vst.msk [vmem:[#allocation3 + $0x8] sm:$0xff] %vm177_vm2, %v303_v28  ;;  %269 = vst.msk [vmem:[#allocation3] sm:$0xff] %vm177_vm2, %v268_v29 }
  0xed   :  { %285 = vrot.lane.b32.xlu1 %v283_v32, %s717_s8  ;;  %275 = vrot.lane.b32.xlu0 %v273_v33, %s718_s9 }
  0xf1   :  { %295 = vrot.lane.b32.xlu1 %v293_v42, %s719_s25  ;;  %328 = vrot.lane.b32.xlu0 %v326_v43, %s719_s25 }
 0x15b   :  { %v320_v48 = vpop.permute.xlu1 %319  ;;  %v311_v49 = vpop.permute.xlu0 %310 }
 0x15c   :  { %313 = vst.msk [vmem:[#allocation3 + $0x8] sm:$0xff] %vm278_vm3, %v311_v49 }
 0x15d   :  { %322 = vst.msk [vmem:[#allocation3 + $0x8] sm:$0xff] %vm288_vm4, %v320_v48 }
 0x15f   :  { %v286_v50 = vpop.permute.xlu1 %285  ;;  %v276_v51 = vpop.permute.xlu0 %275 }
 0x160   :  { %279 = vst.msk [vmem:[#allocation3] sm:$0xff] %vm278_vm3, %v276_v51 }
 0x161   :  { %289 = vst.msk [vmem:[#allocation3] sm:$0xff] %vm288_vm4, %v286_v50 }
 0x163   :  { %v296_v52 = vpop.permute.xlu1 %295  ;;  %v329_v53 = vpop.permute.xlu0 %328 }
 0x164   :  { %299 = vst.msk [vmem:[#allocation3] sm:$0xff] %vm298_vm5, %v296_v52  ;;  %331 = vst.msk [vmem:[#allocation3 + $0x8] sm:$0xff] %vm298_vm5, %v329_v53 }
 0x16b   :  { %v333_v2 = vld [vmem:[#allocation3 + $0x8] sm:$0xff]  ;;  %v332_v54 = vld [vmem:[#allocation3] sm:$0xff] }
 0x16c   :  { %454 = vmatprep.mubr.f32.mxu1 %v333_v2 }
 0x16d   :  { %455 = vmatmul.mubr.f32.vlgmr.msra.gmra.mxu1 %v332_v54 }
 0x19b   :  { %v526_v55 = vpop.f32.mrf.mxu0 }
 0x19d   :  { %v705_v56 = vpop.f32.mrf.mxu0 }
 0x22d   :  { %v616_v57 = vpop.f32.mrf.mxu1 }
 0x22f   :  { %v617_v58 = vpop.f32.mrf.mxu1 }
 0x230   :  { %v618_v60 = vadd.f32 %v617_v58, %v616_v57 }
 0x232   :  { %v457_v61 = vadd.f32 %v618_v60, %v564_v59 }
 0x234   :  { %v527_v62 = vadd.f32 %v526_v55, %v457_v61 }
 0x236   :  { %v532_v63 = vsel %vm530_vm6, %v527_v62, -inf  ;;  %531 = vst.msk [vmem:[%s1028_s6] sm:$0xff] %vm530_vm6, %v527_v62 }
 0x237   :  { %533 = vmax.xlane.f32.xlu0 %v532_v63 }
 0x2c0   :  { %v534_v0 = vpop.xlane.xlu0 %533 }
 0x2c1   :  { %v535_v1 = vsub.f32 %v527_v62, %v534_v0 }
 0x2c3   :  { %v536_v3 = vmul.f32 1.442695, %v535_v1 }
 0x2c5   :  { %711 = vpow2.f32 %v536_v3 }
 0x2d2   :  { %v712_v4 = vpop.eup %711 }
 0x2d3   :  { %v538_v5 = vsel %vm530_vm6, %v712_v4, 0.0 }
 0x2d4   :  { %539 = vadd.xlane.f32.xlu1 %v538_v5 }
 0x35d   :  { %v540_v6 = vpop.xlane.xlu1 %539 }
 0x35e   :  { %713 = vrcp.f32 %v540_v6 }
 0x36b   :  { %v714_v7 = vpop.eup %713 }
 0x36c   :  { %v542_v8 = vmul.f32 %v714_v7, %v540_v6 }
 0x36e   :  { %v543_v9 = vsub.f32 2.0, %v542_v8 }
 0x370   :  { %v544_v10 = vmul.f32 %v714_v7, %v543_v9 }
 0x372   :  { %v545_v11 = vmul.f32 %v712_v4, %v544_v10 }
 0x374   :  { %546 = vst.msk [vmem:[%s1029_s7] sm:$0xff] %vm530_vm6, %v545_v11 }

</bundles_post_ra>
